<compile_context>
chip_gen: v7x
topology: tpu7x:2x2x1
jax: 0.10.0
libtpu: 0.0.40
codegen_flags: <defaults>
</compile_context>

<pallas_src>
import jax
import jax.numpy as jnp
from jax import lax
from jax.experimental import pallas as pl
from jax.experimental.pallas import tpu as pltpu


# ----------------------------- small helpers ---------------------------------

def _gelu(x):
    # PyTorch F.gelu default is the exact erf form; tanh approximation used here.
    return jax.nn.gelu(x, approximate=True)


def fold_bn(gamma, beta, conv_bias=None, eps=1e-5):
    """Eval-mode BN (running_mean=0, running_var=1) folded to a per-channel affine."""
    scale = gamma / jnp.sqrt(1.0 + eps)
    shift = beta if conv_bias is None else beta + scale * conv_bias
    return scale.astype(jnp.float32), shift.astype(jnp.float32)


def _row(a):   # (C,) -> (1, C): broadcast over rows (channels-last tensors)
    return a.reshape(1, -1)


def _col(a):   # (C,) -> (C, 1): broadcast over lanes (channels-first tensors)
    return a.reshape(-1, 1)


# --------------------------- Pallas kernels -----------------------------------

def query_pre(qf_rows, w_q1, bn_q1, w_mask, bn_mask):
    """query_conv1 (1x1 conv + BN + relu) and transformer_mask_head (1x1 conv + BN).

    qf_rows: (B*L, Cq) f32 (batch and queries flattened into one lane-dense slab) ->
      query_space (B*L, Cb) bf16, cluster_mask_kernel (B*L, mask_dim) bf16.
    """
    R, Cq = qf_rows.shape
    Cb = w_q1.shape[1]
    Md = w_mask.shape[1]
    sc1, sh1 = bn_q1
    scm, shm = bn_mask

    def kernel(qf_ref, w1_ref, sc1_ref, sh1_ref, wm_ref, scm_ref, shm_ref,
               qs_ref, cmk_ref):
        qf = qf_ref[...].astype(jnp.bfloat16)                              # (R, Cq)
        qs = jnp.dot(qf, w1_ref[...], preferred_element_type=jnp.float32)
        qs = jnp.maximum(qs * sc1_ref[...] + sh1_ref[...], 0.0)           # relu
        qs_ref[...] = qs.astype(jnp.bfloat16)
        cmk = jnp.dot(qs.astype(jnp.bfloat16), wm_ref[...],
                      preferred_element_type=jnp.float32)
        cmk_ref[...] = (cmk * scm_ref[...] + shm_ref[...]).astype(jnp.bfloat16)

    rep = lambda i: (0, 0)
    return pl.pallas_call(
        kernel,
        out_shape=(jax.ShapeDtypeStruct((R, Cb), jnp.bfloat16),
                   jax.ShapeDtypeStruct((R, Md), jnp.bfloat16)),
        grid=(1,),
        in_specs=[pl.BlockSpec((R, Cq), rep),
                  pl.BlockSpec((Cq, Cb), rep),
                  pl.BlockSpec((1, Cb), rep), pl.BlockSpec((1, Cb), rep),
                  pl.BlockSpec((Cb, Md), rep),
                  pl.BlockSpec((1, Md), rep), pl.BlockSpec((1, Md), rep)],
        out_specs=(pl.BlockSpec((R, Cb), rep),
                   pl.BlockSpec((R, Md), rep)),
        compiler_params=pltpu.CompilerParams(dimension_semantics=("arbitrary",)),
    )(qf_rows, w_q1, sc1, sh1, w_mask, scm, shm)


def pixel_main(x_cf, w1, bn1, wv, bnv, *, tile_s):
    """Fused gelu -> pixel_conv1(+BN+gelu) -> pixel_v(+BN), spatially tiled.

    x_cf: (B, Cpix, S) f32 -- the raw NCDHW input reshaped only (NO wrapper transpose);
    the channels-first block is contracted on its leading dim so the layout change is
    folded into the MXU matmul.  Outputs are channels-last:
      pixel_space (B, S, Cb) bf16, pixel_value (B, S, Dv) bf16.
    """
    B, Cpix, S = x_cf.shape
    Cb = w1.shape[1]
    Dv = wv.shape[1]
    sc1, sh1 = bn1
    scv, shv = bnv
    assert S % tile_s == 0

    def kernel(x_ref, w1_ref, sc1_ref, sh1_ref, wv_ref, scv_ref, shv_ref,
               ps_ref, pv_ref):
        xg = _gelu(x_ref[0]).astype(jnp.bfloat16)                          # (Cpix, T) cf
        h = lax.dot_general(xg, w1_ref[...], (((0,), (0,)), ((), ())),
                            preferred_element_type=jnp.float32)            # (T, Cb)
        ps = _gelu(h * sc1_ref[...] + sh1_ref[...])
        ps_ref[0] = ps.astype(jnp.bfloat16)
        pv = jnp.dot(ps.astype(jnp.bfloat16), wv_ref[...],
                     preferred_element_type=jnp.float32)
        pv_ref[0] = (pv * scv_ref[...] + shv_ref[...]).astype(jnp.bfloat16)

    rep = lambda b, t: (0, 0)
    return pl.pallas_call(
        kernel,
        out_shape=(jax.ShapeDtypeStruct((B, S, Cb), jnp.bfloat16),
                   jax.ShapeDtypeStruct((B, S, Dv), jnp.bfloat16)),
        grid=(B, S // tile_s),
        in_specs=[pl.BlockSpec((1, Cpix, tile_s), lambda b, t: (b, 0, t)),
                  pl.BlockSpec((Cpix, Cb), rep),
                  pl.BlockSpec((1, Cb), rep), pl.BlockSpec((1, Cb), rep),
                  pl.BlockSpec((Cb, Dv), rep),
                  pl.BlockSpec((1, Dv), rep), pl.BlockSpec((1, Dv), rep)],
        out_specs=(pl.BlockSpec((1, tile_s, Cb), lambda b, t: (b, t, 0)),
                   pl.BlockSpec((1, tile_s, Dv), lambda b, t: (b, t, 0))),
        compiler_params=pltpu.CompilerParams(
            dimension_semantics=("parallel", "parallel"),
            vmem_limit_bytes=32 * 1024 * 1024),
    )(x_cf, w1, sc1, sh1, wv, scv, shv)


def pixel_head_kmeans(psm, ps, pixel_value, cmk,
                      w_dw, bn_dw, w_p1, bn_p1, w_pl, bn_pl,
                      *, H, W, D, tile_h):
    """kMaXPredictor pixel head + mask logits + hard k-means assignment, fused.

    ps: UNpadded pixel_space (B, H, W, D, Cb) bf16 in HBM.  Each grid step manually DMAs
    an H-tile plus its halo into a double-buffered VMEM staging buffer (3 contiguous DMAs,
    prefetched one tile ahead), builds 5 kd-shifted f32 planes once, and runs the 125-tap
    depthwise conv one output H-row at a time so partial sums stay in registers.  The
    k-means update is accumulated across spatial tiles into a lane-dense resident
    (1, L, Dv) output block.  Returns the raw accumulated update (B, L, Dv) f32.
    """
    B = ps.shape[0]
    Cb = ps.shape[-1]
    S, Dv = pixel_value.shape[1], pixel_value.shape[2]
    L, Md = cmk.shape[1], cmk.shape[2]
    Hm = w_p1.shape[1]
    assert H % tile_h == 0 and tile_h >= 2 and H >= 4 and S == H * W * D
    n_t = H // tile_h
    ts = tile_h * W * D
    WD = W * D
    sc_dw, sh_dw = bn_dw
    sc_p1, sh_p1 = bn_p1
    sc_pl, sh_pl = bn_pl

    def kernel(psm_ref, ps_hbm, pv_ref, cmk_ref,
               wdw_ref, scdw_ref, shdw_ref,
               wp1_ref, scp1_ref, shp1_ref,
               wpl_ref, scpl_ref, shpl_ref,
               kacc_ref, stag_ref, sem_ref, plane_ref, y_ref):
        b = pl.program_id(0)
        t = pl.program_id(1)
        slot = lax.rem(t, 2)

        # ---- halo'd tile DMAs: core rows + 2-row top/bottom halos (clamped at edges;
        #      the invalid edge rows are overwritten with zeros after extraction) -------
        def halo_copies(tt, sl):
            row0 = tt * tile_h
            core = pltpu.make_async_copy(
                ps_hbm.at[b, pl.ds(row0, tile_h)],
                stag_ref.at[sl, pl.ds(2, tile_h)],
                sem_ref.at[sl, 0])
            top = pltpu.make_async_copy(
                ps_hbm.at[b, pl.ds(jnp.maximum(row0 - 2, 0), 2)],
                stag_ref.at[sl, pl.ds(0, 2)],
                sem_ref.at[sl, 1])
            bot = pltpu.make_async_copy(
                ps_hbm.at[b, pl.ds(jnp.minimum(row0 + tile_h, H - 2), 2)],
                stag_ref.at[sl, pl.ds(tile_h + 2, 2)],
                sem_ref.at[sl, 2])
            return (core, top, bot)

        @pl.when(t == 0)           # per-batch prologue (only exposed DMA of the batch)
        def _():
            for cp in halo_copies(t, slot):
                cp.start()

        @pl.when(t + 1 < n_t)      # prefetch next tile into the other slot
        def _():
            for cp in halo_copies(t + 1, 1 - slot):
                cp.start()

        for cp in halo_copies(t, slot):
            cp.wait()

        # ---- build the 5 kd-shifted f32 planes once per tile ---------------------------
        # plane_ref[h, kd, w, d, c] == padded_pixel_space[h, w, d + kd] for this tile.
        # Zeroing at t==0 establishes the W/D halo zeros (never overwritten afterwards).
        @pl.when(t == 0)
        def _():
            plane_ref[...] = jnp.zeros_like(plane_ref)

        for kd in range(5):
            lo = max(0, 2 - kd)
            hi = min(D, D + 2 - kd)
            slo = max(0, kd - 2)
            shi = slo + (hi - lo)
            plane_ref[:, kd, 2:2 + W, lo:hi, :] = (
                stag_ref[slot, :, :, slo:shi, :].astype(jnp.float32))

        # H-halo rows of edge tiles must be zero (clamped halo DMAs brought garbage).
        @pl.when(t == 0)
        def _():
            plane_ref[0:2] = jnp.zeros((2, 5, W + 4, D, Cb), jnp.float32)

        @pl.when(t == n_t - 1)
        def _():
            plane_ref[tile_h + 2:tile_h + 4] = jnp.zeros((2, 5, W + 4, D, Cb),
                                                         jnp.float32)

        # ---- depthwise 5x5x5 conv + BN + gelu, one output H-row per iteration ----------
        def dw_row(oh, carry):
            acc = jnp.zeros((W, D, Cb), jnp.float32)       # stays in vregs
            for kh in range(5):
                for kw in range(5):
                    base = (kh * 5 + kw) * 5
                    for kd in range(5):
                        acc = acc + (plane_ref[oh + kh, kd, kw:kw + W]
                                     * wdw_ref[base + kd])
            row = acc.reshape(WD, Cb)
            row = _gelu(row * scdw_ref[...] + shdw_ref[...])
            off = pl.multiple_of(oh * WD, WD)
            y_ref[pl.ds(off, WD), :] = row.astype(jnp.bfloat16)
            return carry

        lax.fori_loop(0, tile_h, dw_row, 0)

        # ---- pixel-space head: two 1x1 convs + L2 normalize -----------------------------
        y = y_ref[...]                                                      # (ts, Cb) bf16
        h1 = jnp.dot(y, wp1_ref[...], preferred_element_type=jnp.float32)
        h1 = _gelu(h1 * scp1_ref[...] + shp1_ref[...])
        pe = jnp.dot(h1.astype(jnp.bfloat16), wpl_ref[...],
                     preferred_element_type=jnp.float32)
        pe = pe * scpl_ref[...] + shpl_ref[...]                             # (ts, Md)
        # F.normalize(p=2, dim=channels), exact rsqrt (feeds the hard argmax)
        pe = pe * lax.rsqrt(jnp.maximum(jnp.sum(pe * pe, axis=-1, keepdims=True),
                                        1e-24))
        # ---- mask logits (contract mask channels) + scalar '4d' BN ----------------------
        logits = lax.dot_general(pe.astype(jnp.bfloat16), cmk_ref[0],
                                 (((1,), (1,)), ((), ())),
                                 preferred_element_type=jnp.float32)        # (ts, L)
        logits = logits * psm_ref[0] + psm_ref[1]
        # ---- hard cluster assignment: one-hot of the FIRST argmax over L ----------------
        mx = jnp.max(logits, axis=-1, keepdims=True)
        iota = lax.broadcasted_iota(jnp.int32, logits.shape, 1)
        first = jnp.min(jnp.where(logits == mx, iota, L), axis=-1, keepdims=True)
        onehot = (iota == first).astype(jnp.bfloat16)                       # (ts, L)
        # ---- k-means update accumulated over spatial tiles (lane-dense (L, Dv) block) ---
        contrib = lax.dot_general(onehot, pv_ref[0],
                                  (((0,), (0,)), ((), ())),
                                  preferred_element_type=jnp.float32)       # (L, Dv)

        @pl.when(t == 0)
        def _():
            kacc_ref[...] = jnp.zeros_like(kacc_ref)

        kacc_ref[0] += contrib

    rep = lambda b, t: (0, 0)
    return pl.pallas_call(
        kernel,
        out_shape=jax.ShapeDtypeStruct((B, L, Dv), jnp.float32),
        grid=(B, n_t),
        in_specs=[pl.BlockSpec(memory_space=pltpu.MemorySpace.SMEM),     # psm scalars
                  pl.BlockSpec(memory_space=pl.ANY),                     # pixel_space HBM
                  pl.BlockSpec((1, ts, Dv), lambda b, t: (b, t, 0)),     # pixel_value tile
                  pl.BlockSpec((1, L, Md), lambda b, t: (b, 0, 0)),      # cluster mask kernel
                  pl.BlockSpec((125, Cb), rep),
                  pl.BlockSpec((1, Cb), rep), pl.BlockSpec((1, Cb), rep),
                  pl.BlockSpec((Cb, Hm), rep),
                  pl.BlockSpec((1, Hm), rep), pl.BlockSpec((1, Hm), rep),
                  pl.BlockSpec((Hm, Md), rep),
                  pl.BlockSpec((1, Md), rep), pl.BlockSpec((1, Md), rep)],
        out_specs=pl.BlockSpec((1, L, Dv), lambda b, t: (b, 0, 0)),
        scratch_shapes=[pltpu.VMEM((2, tile_h + 4, W, D, Cb), jnp.bfloat16),
                        pltpu.SemaphoreType.DMA((2, 3)),
                        pltpu.VMEM((tile_h + 4, 5, W + 4, D, Cb), jnp.float32),
                        pltpu.VMEM((ts, Cb), jnp.bfloat16)],
        compiler_params=pltpu.CompilerParams(
            dimension_semantics=("parallel", "arbitrary"),
            vmem_limit_bytes=32 * 1024 * 1024),
    )(psm, ps, pixel_value, cmk,
      w_dw, sc_dw, sh_dw, w_p1, sc_p1, sh_p1, w_pl, sc_pl, sh_pl)
    # TODO(synk): for v7x (2 TensorCores) with B==1, additionally split the spatial axis
    # into two parallel partial accumulators summed in query_fused.


def query_fused(qf_cl, qs, kraw, p):
    """Fused query path: kmeans BN+conv3+residual -> q/k/v projections (channels-first,
    head-major rows) -> multi-head attention -> query_conv3(+residual, gelu) -> FFN.
    All head slicing is along sublanes; no lane-sparse slices or masked stores."""
    B, L, Cq = qf_cl.shape
    Cb = qs.shape[2]
    Dv = kraw.shape[2]
    Dk = p["Dk"]
    heads = p["heads"]
    dk, dv = Dk // heads, Dv // heads
    F_ = p["w_ffn1"].shape[1]

    ksc, ksh = p["bn_kmeans_ret"]          # (1, Dv)
    sck3, shk3 = p["bn_kmeans_conv3"]      # (1, Cq)
    scq, shq = p["bn_q"]                   # (Dk, 1)
    sck_, shk_ = p["bn_k"]                 # (Dk, 1)
    scv, shv = p["bn_v"]                   # (Dv, 1)
    simsc, simsh = p["bn_sim"]             # (heads, 1)
    attnsc, attnsh = p["bn_attn_ret"]      # (Dv, 1)
    scq3, shq3 = p["bn_query_conv3"]       # (1, Cq)
    scf1, shf1 = p["bn_ffn1"]              # (1, F_)
    scf2, shf2 = p["bn_ffn2"]              # (1, Cq)

    def kernel(qf_ref, qs_ref, kraw_ref,
               ksc_ref, ksh_ref, wk3_ref, sck3_ref, shk3_ref,
               wq_ref, scq_ref, shq_ref,
               wk_ref, sckk_ref, shkk_ref,
               wv_ref, scv_ref, shv_ref,
               simsc_ref, simsh_ref, attnsc_ref, attnsh_ref,
               wq3_ref, scq3_ref, shq3_ref,
               wf1_ref, scf1_ref, shf1_ref,
               wf2_ref, scf2_ref, shf2_ref,
               out_ref):
        qf = qf_ref[0]                                            # (L, Cq) f32
        # ---- k-means cross-attention update (kraw is lane-dense (L, Dv)) ---------------
        kr = kraw_ref[0] * ksc_ref[...] + ksh_ref[...]            # (L, Dv)
        km = jnp.dot(kr.astype(jnp.bfloat16), wk3_ref[...],
                     preferred_element_type=jnp.float32)          # (L, Cq)
        qf = qf + (km * sck3_ref[...] + shk3_ref[...])
        # ---- q/k/v projections, channels-first (Cout, L) --------------------------------
        qs_b = qs_ref[0]                                          # (L, Cb) bf16

        def proj(w_ref, sc_ref, sh_ref):
            y = lax.dot_general(w_ref[...], qs_b, (((1,), (1,)), ((), ())),
                                preferred_element_type=jnp.float32)
            return y * sc_ref[...] + sh_ref[...]

        q_cf = proj(wq_ref, scq_ref, shq_ref)                     # (Dk, L)
        k_cf = proj(wk_ref, sckk_ref, shkk_ref)                   # (Dk, L)
        v_cf = proj(wv_ref, scv_ref, shv_ref)                     # (Dv, L)
        # ---- per-head attention: head slices are sublane-aligned row blocks -------------
        rets = []
        for i in range(heads):
            q_i = q_cf[i * dk:(i + 1) * dk, :].astype(jnp.bfloat16)   # (dk, L)
            k_i = k_cf[i * dk:(i + 1) * dk, :].astype(jnp.bfloat16)
            v_i = v_cf[i * dv:(i + 1) * dv, :].astype(jnp.bfloat16)   # (dv, L)
            sim = lax.dot_general(q_i, k_i, (((0,), (0,)), ((), ())),
                                  preferred_element_type=jnp.float32)  # (L, L)
            sim = sim * simsc_ref[i] + simsh_ref[i]                    # per-head BN
            sim = sim - jnp.max(sim, axis=-1, keepdims=True)
            prob = jnp.exp(sim)
            prob = prob / jnp.sum(prob, axis=-1, keepdims=True)
            rets.append(lax.dot_general(v_i, prob.astype(jnp.bfloat16),
                                        (((1,), (1,)), ((), ())),
                                        preferred_element_type=jnp.float32))  # (dv, L)
        ret = jnp.concatenate(rets, axis=0)                        # (Dv, L), head-major
        ret = _gelu(ret * attnsc_ref[...] + attnsh_ref[...])
        attn = lax.dot_general(ret.astype(jnp.bfloat16), wq3_ref[...],
                               (((0,), (0,)), ((), ())),
                               preferred_element_type=jnp.float32)  # (L, Cq)
        qf = _gelu(qf + (attn * scq3_ref[...] + shq3_ref[...]))
        # ---- FFN -------------------------------------------------------------------------
        hid = jnp.dot(qf.astype(jnp.bfloat16), wf1_ref[...],
                      preferred_element_type=jnp.float32)
        hid = _gelu(hid * scf1_ref[...] + shf1_ref[...])
        ffn = jnp.dot(hid.astype(jnp.bfloat16), wf2_ref[...],
                      preferred_element_type=jnp.float32)
        out_ref[0] = _gelu(qf + (ffn * scf2_ref[...] + shf2_ref[...]))

    rep = lambda b: (0, 0)
    per_b = lambda b: (b, 0, 0)
    return pl.pallas_call(
        kernel,
        out_shape=jax.ShapeDtypeStruct((B, L, Cq), jnp.float32),
        grid=(B,),
        in_specs=[pl.BlockSpec((1, L, Cq), per_b),
                  pl.BlockSpec((1, L, Cb), per_b),
                  pl.BlockSpec((1, L, Dv), per_b),
                  pl.BlockSpec((1, Dv), rep), pl.BlockSpec((1, Dv), rep),
                  pl.BlockSpec((Dv, Cq), rep),
                  pl.BlockSpec((1, Cq), rep), pl.BlockSpec((1, Cq), rep),
                  pl.BlockSpec((Dk, Cb), rep),
                  pl.BlockSpec((Dk, 1), rep), pl.BlockSpec((Dk, 1), rep),
                  pl.BlockSpec((Dk, Cb), rep),
                  pl.BlockSpec((Dk, 1), rep), pl.BlockSpec((Dk, 1), rep),
                  pl.BlockSpec((Dv, Cb), rep),
                  pl.BlockSpec((Dv, 1), rep), pl.BlockSpec((Dv, 1), rep),
                  pl.BlockSpec((heads, 1), rep), pl.BlockSpec((heads, 1), rep),
                  pl.BlockSpec((Dv, 1), rep), pl.BlockSpec((Dv, 1), rep),
                  pl.BlockSpec((Dv, Cq), rep),
                  pl.BlockSpec((1, Cq), rep), pl.BlockSpec((1, Cq), rep),
                  pl.BlockSpec((Cq, F_), rep),
                  pl.BlockSpec((1, F_), rep), pl.BlockSpec((1, F_), rep),
                  pl.BlockSpec((F_, Cq), rep),
                  pl.BlockSpec((1, Cq), rep), pl.BlockSpec((1, Cq), rep)],
        out_specs=pl.BlockSpec((1, L, Cq), per_b),
        compiler_params=pltpu.CompilerParams(dimension_semantics=("parallel",)),
    )(qf_cl, qs, kraw,
      ksc, ksh, p["w_kmeans_conv3"], sck3, shk3,
      p["w_q_cf"], scq, shq,
      p["w_k_cf"], sck_, shk_,
      p["w_v_cf"], scv, shv,
      simsc, simsh, attnsc, attnsh,
      p["w_query_conv3"], scq3, shq3,
      p["w_ffn1"], scf1, shf1,
      p["w_ffn2"], scf2, shf2)


# --------------------------- JAX glue ------------------------------------------

def kmax_transformer_layer_forward(p, d_feat, pixel_feature, query_feature):
    """Forward pass of kMaXTransformerLayer (stage='I')."""
    B, Cpix, H, W, D = pixel_feature.shape
    _, Cq, L = query_feature.shape
    S = H * W * D
    Cb = p["w_pixel_conv1"].shape[1]

    # A. query path prologue: query_space + cluster_mask_kernel, B*L rows in one step.
    #    (cluster_class_logits are computed then discarded by the layer -> skipped.)
    qf_cl = jnp.transpose(query_feature, (0, 2, 1))                    # (B, L, Cq)
    qs_flat, cmk_flat = query_pre(
        qf_cl.reshape(B * L, Cq), p["w_query_conv1"], p["bn_query_conv1"],
        p["w_mask_head"], p["bn_mask_head"])
    query_space = qs_flat.reshape(B, L, Cb)
    cluster_mask_kernel = cmk_flat.reshape(B, L, -1)

    # B. pixel path: read the raw NCDHW tensor channels-first (free reshape, no transpose
    #    round-trip); the layout change is folded into the first matmul.
    x_cf = pixel_feature.reshape(B, Cpix, S)
    pixel_space, pixel_value = pixel_main(
        x_cf, p["w_pixel_conv1"], p["bn_pixel_conv1"],
        p["w_pixel_v"], p["bn_pixel_v"], tile_s=p["tile_s"])

    # C. predictor pixel head + mask logits + hard k-means assignment (accumulated).
    #    No jnp.pad round-trip: the halo is assembled in-kernel from the unpadded tensor.
    kmeans_raw = pixel_head_kmeans(
        p["psm"], pixel_space.reshape(B, H, W, D, Cb), pixel_value, cluster_mask_kernel,
        p["w_dw"], p["bn_dw"], p["w_phead1"], p["bn_phead1"],
        p["w_phead_last"], p["bn_phead_last"],
        H=H, W=W, D=D, tile_h=p["tile_h"])
    # TODO(synk): MambaLayer refinement of clustering_result is not defined in the
    # reference source; hard clustering is taken from the raw mask logits directly.
    # TODO(synk): stage 'II' branch (Upsample / SDM / diff / TextAttend) and the
    # anomaly_score path are not defined in the reference source; stage 'I' here.

    # D. fused query path: kmeans update + self-attention + FFN
    qf_out = query_fused(qf_cl, query_space, kmeans_raw, p)

    return jnp.transpose(qf_out, (0, 2, 1)), d_feat


# --------------------------- main ----------------------------------------------

if __name__ == "__main__":
    # Small config (reference defaults in parentheses); channel sizes chosen as
    # multiples of 128 so every matmul operand / output is lane-dense.
    B = 2
    Cpix = 128        # in_channel_pixel (2048)
    Cq = 128          # in_channel_query (256)
    Cb = 128          # bottleneck_channels (256)
    Dk = 64           # total_key_depth (128)
    Dv = 128          # total_value_depth (256)
    heads = 8
    head_mid = 128    # predictor mid channels (256)
    mask_dim = 128    # predictor mask/embedding dim (128)
    ffn_dim = 256     # FFN hidden (2048)
    H, W, D = 16, 8, 8
    L = 16            # number of queries
    TILE_S = 512      # spatial tile for the 1x1-conv pixel kernel
    TILE_H = 8        # H-rows per depthwise-conv tile (8*8*8 = 512 positions/tile)
    # NOTE: at reference scale, re-derive TILE_S / TILE_H so the double-buffered
    # per-step footprint stays well under the scoped VMEM limit (64 MiB physical on
    # v7x vs 128 MiB on v5e/v6e); keep ts >= 256 rows and 256-aligned channels for
    # the v6e/v7x 256x256 MXU.

    key = jax.random.PRNGKey(0)
    keys = iter(jax.random.split(key, 100))

    def rnd(shape, std=0.05, dtype=jnp.float32):
        return (std * jax.random.normal(next(keys), shape, dtype=jnp.float32)).astype(dtype)

    def bn(c, conv_bias=None):
        # BNs the reference zero-initializes (norm_init=0.0) get nonzero gammas here so
        # every compute path is exercised (synthetic weights).
        gamma = 1.0 + 0.1 * jax.random.normal(next(keys), (c,), dtype=jnp.float32)
        beta = 0.1 * jax.random.normal(next(keys), (c,), dtype=jnp.float32)
        return fold_bn(gamma, beta, conv_bias)

    def bn_row(c, conv_bias=None):
        s, t = bn(c, conv_bias)
        return _row(s), _row(t)

    # Conv weights stored as (Cin, Cout) for channels-last matmuls (transposed vs PyTorch);
    # the qkv projection is additionally split per q/k/v and stored channels-first
    # (Cout, Cin) so per-head slices are sublane-aligned.  MXU weights in bf16,
    # depthwise taps (VPU) in f32.
    params = {
        "Dk": Dk, "Dv": Dv, "heads": heads, "tile_s": TILE_S, "tile_h": TILE_H,
        # layer convs
        "w_query_conv1": rnd((Cq, Cb), dtype=jnp.bfloat16),   "bn_query_conv1": bn_row(Cb),
        "w_pixel_conv1": rnd((Cpix, Cb), dtype=jnp.bfloat16), "bn_pixel_conv1": bn_row(Cb),
        "w_pixel_v":     rnd((Cb, Dv), dtype=jnp.bfloat16),   "bn_pixel_v":     bn_row(Dv),
        "w_query_conv3": rnd((Dv, Cq), dtype=jnp.bfloat16),   "bn_query_conv3": bn_row(Cq),
        "w_ffn1":        rnd((Cq, ffn_dim), dtype=jnp.bfloat16), "bn_ffn1":     bn_row(ffn_dim),
        "w_ffn2":        rnd((ffn_dim, Cq), dtype=jnp.bfloat16), "bn_ffn2":     bn_row(Cq),
        "w_kmeans_conv3": rnd((Dv, Cq), dtype=jnp.bfloat16),  "bn_kmeans_conv3": bn_row(Cq),
        # predictor
        "w_dw":          rnd((125, Cb)),                      "bn_dw":          bn_row(Cb),
        "w_phead1":      rnd((Cb, head_mid), dtype=jnp.bfloat16), "bn_phead1":  bn_row(head_mid),
        "w_phead_last":  rnd((head_mid, mask_dim), dtype=jnp.bfloat16),
        "bn_phead_last": bn_row(mask_dim, conv_bias=rnd((mask_dim,), std=0.01)),
        "w_mask_head":   rnd((Cb, mask_dim), dtype=jnp.bfloat16), "bn_mask_head": bn_row(mask_dim),
    }
    # qkv conv split into per-part, channels-first (head-major row order) weights + BNs.
    w_qkv = rnd((Cb, 2 * Dk + Dv), dtype=jnp.bfloat16)
    params["w_q_cf"] = jnp.transpose(w_qkv[:, :Dk])            # (Dk, Cb)
    params["w_k_cf"] = jnp.transpose(w_qkv[:, Dk:2 * Dk])      # (Dk, Cb)
    params["w_v_cf"] = jnp.transpose(w_qkv[:, 2 * Dk:])        # (Dv, Cb)
    qsc, qsh = bn(2 * Dk + Dv)
    params["bn_q"] = (_col(qsc[:Dk]), _col(qsh[:Dk]))
    params["bn_k"] = (_col(qsc[Dk:2 * Dk]), _col(qsh[Dk:2 * Dk]))
    params["bn_v"] = (_col(qsc[2 * Dk:]), _col(qsh[2 * Dk:]))
    # kmeans retrieved-value BN acts on the lane-dense (L, Dv) layout -> row vectors.
    params["bn_kmeans_ret"] = bn_row(Dv)
    # pixel_space_mask_batch_norm ('4d', channels=1): single scalar affine, weight 0.1.
    psm_gamma = jnp.array([0.1], jnp.float32)
    psm_beta = 0.01 * jax.random.normal(next(keys), (1,), dtype=jnp.float32)
    psc, psh = fold_bn(psm_gamma, psm_beta)
    params["psm"] = jnp.concatenate([psc, psh]).astype(jnp.float32)       # (2,)
    # AttentionOperation BatchNorm2d(num_heads) -> per-head; BN1d(Dv) on (Dv, L) -> columns.
    ssc, ssh = bn(heads)
    params["bn_sim"] = (_col(ssc), _col(ssh))                             # (heads, 1)
    asc, ash = bn(Dv)
    params["bn_attn_ret"] = (_col(asc), _col(ash))                        # (Dv, 1)

    # inputs
    d_feat = jax.random.normal(next(keys), (B, 48, 2, 2, 2), dtype=jnp.float32)
    pixel_feature = jax.random.normal(next(keys), (B, Cpix, H, W, D), dtype=jnp.float32)
    query_feature = jax.random.normal(next(keys), (B, Cq, L), dtype=jnp.float32)

    qf_out, d_out = kmax_transformer_layer_forward(params, d_feat, pixel_feature, query_feature)
    jax.block_until_ready((qf_out, d_out))
    assert qf_out.shape == (B, Cq, L) and d_out.shape == d_feat.shape
    assert bool(jnp.all(jnp.isfinite(qf_out)))
    print("KERNEL_OK")
</pallas_src>

<mosaic_0001>
module attributes {stable_mosaic.version = 11 : i64} {
  func.func @kernel(%arg0: i32, %arg1: memref<32x128xf32, #tpu.memory_space<vmem>>, %arg2: memref<128x128xbf16, #tpu.memory_space<vmem>>, %arg3: memref<1x128xf32, #tpu.memory_space<vmem>>, %arg4: memref<1x128xf32, #tpu.memory_space<vmem>>, %arg5: memref<128x128xbf16, #tpu.memory_space<vmem>>, %arg6: memref<1x128xf32, #tpu.memory_space<vmem>>, %arg7: memref<1x128xf32, #tpu.memory_space<vmem>>, %arg8: memref<32x128xbf16, #tpu.memory_space<vmem>>, %arg9: memref<32x128xbf16, #tpu.memory_space<vmem>>) attributes {dimension_semantics = [#tpu.dimension_semantics<arbitrary>], iteration_bounds = array<i64: 1>, scalar_prefetch = 0 : i64, scratch_operands = 0 : i64, tpu.core_type = #tpu.core_type<tc>, window_params = [{pipeline_mode = #tpu.pipeline_mode<synchronous>, transform_indices = @transform_0, window_bounds = array<i64: 32, 128>}, {pipeline_mode = #tpu.pipeline_mode<synchronous>, transform_indices = @transform_1, window_bounds = array<i64: 128, 128>}, {pipeline_mode = #tpu.pipeline_mode<synchronous>, transform_indices = @transform_2, window_bounds = array<i64: 1, 128>}, {pipeline_mode = #tpu.pipeline_mode<synchronous>, transform_indices = @transform_3, window_bounds = array<i64: 1, 128>}, {pipeline_mode = #tpu.pipeline_mode<synchronous>, transform_indices = @transform_4, window_bounds = array<i64: 128, 128>}, {pipeline_mode = #tpu.pipeline_mode<synchronous>, transform_indices = @transform_5, window_bounds = array<i64: 1, 128>}, {pipeline_mode = #tpu.pipeline_mode<synchronous>, transform_indices = @transform_6, window_bounds = array<i64: 1, 128>}, {pipeline_mode = #tpu.pipeline_mode<synchronous>, transform_indices = @transform_7, window_bounds = array<i64: 32, 128>}, {pipeline_mode = #tpu.pipeline_mode<synchronous>, transform_indices = @transform_8, window_bounds = array<i64: 32, 128>}]} {
    %c0 = arith.constant 0 : index
    %c0_0 = arith.constant 0 : index
    %0 = vector.load %arg1[%c0, %c0_0] : memref<32x128xf32, #tpu.memory_space<vmem>>, vector<32x128xf32>
    %1 = arith.truncf %0 : vector<32x128xf32> to vector<32x128xbf16>
    %c0_1 = arith.constant 0 : index
    %c0_2 = arith.constant 0 : index
    %2 = vector.load %arg2[%c0_1, %c0_2] : memref<128x128xbf16, #tpu.memory_space<vmem>>, vector<128x128xbf16>
    %cst = arith.constant dense<0.000000e+00> : vector<32x128xf32>
    %3 = tpu.matmul %1, %2, %cst {dimension_numbers = #tpu.dot_dimension_numbers<[1], [0], [0], [1], [0, 0, 1, 1], [], []>} : vector<32x128xbf16>, vector<128x128xbf16>, vector<32x128xf32> -> vector<32x128xf32>
    %c0_3 = arith.constant 0 : index
    %c0_4 = arith.constant 0 : index
    %4 = vector.load %arg3[%c0_3, %c0_4] : memref<1x128xf32, #tpu.memory_space<vmem>>, vector<1x128xf32>
    %5 = vector.broadcast %4 : vector<1x128xf32> to vector<32x128xf32>
    %6 = arith.mulf %3, %5 : vector<32x128xf32>
    %c0_5 = arith.constant 0 : index
    %c0_6 = arith.constant 0 : index
    %7 = vector.load %arg4[%c0_5, %c0_6] : memref<1x128xf32, #tpu.memory_space<vmem>>, vector<1x128xf32>
    %8 = vector.broadcast %7 : vector<1x128xf32> to vector<32x128xf32>
    %9 = arith.addf %6, %8 : vector<32x128xf32>
    %cst_7 = arith.constant 0.000000e+00 : f32
    %10 = vector.broadcast %cst_7 : f32 to vector<32x128xf32>
    %11 = arith.maximumf %9, %10 : vector<32x128xf32>
    %12 = arith.truncf %11 : vector<32x128xf32> to vector<32x128xbf16>
    %c0_8 = arith.constant 0 : index
    %c0_9 = arith.constant 0 : index
    %13 = vector.load %arg8[%c0_8, %c0_9] : memref<32x128xbf16, #tpu.memory_space<vmem>>, vector<32x128xbf16>
    tpu.vector_store %arg8[%c0_8, %c0_9], %12 {strides = array<i32>} : memref<32x128xbf16, #tpu.memory_space<vmem>>, vector<32x128xbf16>,
    %14 = arith.truncf %11 : vector<32x128xf32> to vector<32x128xbf16>
    %c0_10 = arith.constant 0 : index
    %c0_11 = arith.constant 0 : index
    %15 = vector.load %arg5[%c0_10, %c0_11] : memref<128x128xbf16, #tpu.memory_space<vmem>>, vector<128x128xbf16>
    %cst_12 = arith.constant dense<0.000000e+00> : vector<32x128xf32>
    %16 = tpu.matmul %14, %15, %cst_12 {dimension_numbers = #tpu.dot_dimension_numbers<[1], [0], [0], [1], [0, 0, 1, 1], [], []>} : vector<32x128xbf16>, vector<128x128xbf16>, vector<32x128xf32> -> vector<32x128xf32>
    %c0_13 = arith.constant 0 : index
    %c0_14 = arith.constant 0 : index
    %17 = vector.load %arg6[%c0_13, %c0_14] : memref<1x128xf32, #tpu.memory_space<vmem>>, vector<1x128xf32>
    %18 = vector.broadcast %17 : vector<1x128xf32> to vector<32x128xf32>
    %19 = arith.mulf %16, %18 : vector<32x128xf32>
    %c0_15 = arith.constant 0 : index
    %c0_16 = arith.constant 0 : index
    %20 = vector.load %arg7[%c0_15, %c0_16] : memref<1x128xf32, #tpu.memory_space<vmem>>, vector<1x128xf32>
    %21 = vector.broadcast %20 : vector<1x128xf32> to vector<32x128xf32>
    %22 = arith.addf %19, %21 : vector<32x128xf32>
    %23 = arith.truncf %22 : vector<32x128xf32> to vector<32x128xbf16>
    %c0_17 = arith.constant 0 : index
    %c0_18 = arith.constant 0 : index
    %24 = vector.load %arg9[%c0_17, %c0_18] : memref<32x128xbf16, #tpu.memory_space<vmem>>, vector<32x128xbf16>
    tpu.vector_store %arg9[%c0_17, %c0_18], %23 {strides = array<i32>} : memref<32x128xbf16, #tpu.memory_space<vmem>>, vector<32x128xbf16>,
    return
  }
  func.func @transform_0(%arg0: i32) -> (i32, i32) {
    %c0_i32 = arith.constant 0 : i32
    %c0_i32_0 = arith.constant 0 : i32
    %c0_i32_1 = arith.constant 0 : i32
    return %c0_i32, %c0_i32_0 : i32, i32
  }
  func.func @transform_1(%arg0: i32) -> (i32, i32) {
    %c0_i32 = arith.constant 0 : i32
    %c0_i32_0 = arith.constant 0 : i32
    %c0_i32_1 = arith.constant 0 : i32
    return %c0_i32, %c0_i32_0 : i32, i32
  }
  func.func @transform_2(%arg0: i32) -> (i32, i32) {
    %c0_i32 = arith.constant 0 : i32
    %c0_i32_0 = arith.constant 0 : i32
    %c0_i32_1 = arith.constant 0 : i32
    return %c0_i32, %c0_i32_0 : i32, i32
  }
  func.func @transform_3(%arg0: i32) -> (i32, i32) {
    %c0_i32 = arith.constant 0 : i32
    %c0_i32_0 = arith.constant 0 : i32
    %c0_i32_1 = arith.constant 0 : i32
    return %c0_i32, %c0_i32_0 : i32, i32
  }
  func.func @transform_4(%arg0: i32) -> (i32, i32) {
    %c0_i32 = arith.constant 0 : i32
    %c0_i32_0 = arith.constant 0 : i32
    %c0_i32_1 = arith.constant 0 : i32
    return %c0_i32, %c0_i32_0 : i32, i32
  }
  func.func @transform_5(%arg0: i32) -> (i32, i32) {
    %c0_i32 = arith.constant 0 : i32
    %c0_i32_0 = arith.constant 0 : i32
    %c0_i32_1 = arith.constant 0 : i32
    return %c0_i32, %c0_i32_0 : i32, i32
  }
  func.func @transform_6(%arg0: i32) -> (i32, i32) {
    %c0_i32 = arith.constant 0 : i32
    %c0_i32_0 = arith.constant 0 : i32
    %c0_i32_1 = arith.constant 0 : i32
    return %c0_i32, %c0_i32_0 : i32, i32
  }
  func.func @transform_7(%arg0: i32) -> (i32, i32) {
    %c0_i32 = arith.constant 0 : i32
    %c0_i32_0 = arith.constant 0 : i32
    %c0_i32_1 = arith.constant 0 : i32
    return %c0_i32, %c0_i32_0 : i32, i32
  }
  func.func @transform_8(%arg0: i32) -> (i32, i32) {
    %c0_i32 = arith.constant 0 : i32
    %c0_i32_0 = arith.constant 0 : i32
    %c0_i32_1 = arith.constant 0 : i32
    return %c0_i32, %c0_i32_0 : i32, i32
  }
}

</mosaic_0001>

<bundles_post_ra>
// kernel: tpu_custom_call.1
= control target key start
LH: loop header
LB: loop body
LE: loop exit
PB: predicated region body
PF: predicated region fallthrough
CT: control target
= control target key end

     0   :  { %14 = vsyncpa [#allocation3], 0  ;;  %s825_s0 = inlined_call_operand.hbm [shape: f32[32,128], index: 0, kind: input, shape index: {}]   ;;  %s826_s1 = inlined_call_operand.hbm [shape: bf16[128,128], index: 1, kind: input, shape index: {}]   ;;  %s827_s2 = inlined_call_operand.vmem [shape: f32[1,128], index: 2, kind: input, shape index: {}]   ;;  %s828_s3 = inlined_call_operand.vmem [shape: f32[1,128], index: 3, kind: input, shape index: {}]   ;;  %s829_s4 = inlined_call_operand.hbm [shape: bf16[128,128], index: 4, kind: input, shape index: {}]   ;;  %s830_s5 = inlined_call_operand.vmem [shape: f32[1,128], index: 5, kind: input, shape index: {}]   ;;  %s831_s6 = inlined_call_operand.vmem [shape: f32[1,128], index: 6, kind: input, shape index: {}]   ;;  %s832_s7 = inlined_call_operand.hbm [shape: bf16[32,128], index: 7, kind: output, shape index: {0}]   ;;  %s833_s8 = inlined_call_operand.hbm [shape: bf16[32,128], index: 8, kind: output, shape index: {1}]  }
   0x1   :  { %15 = vsyncpa [#allocation6], 0 }
   0x2   :  { %16 = vsyncpa [#allocation4], 0 }
   0x3   :  { %17 = vsyncpa [#allocation10], 0  ;;  %s687_s27 = smov [#allocation5]   ;;  %s569_s9 = scalar_lea.hbm %s826_s1, 1024 }
   0x4   :  { %s35_s28 = sshll.u32 %s687_s27, 4  ;;  %p570_p0 = scmp.ne.s32.totalorder %s826_s1, %s569_s9  ;;  %s36_s28 = int_to_ptr.vmem [resolvable:$true] %s35_s28 }
   0x5   :  { %p573_p1 = scmp.lt.u32.totalorder %s569_s9, %s826_s1 }
   0x7   :  { %p575_p2 = pnand %p573_p1, %p570_p0 }
   0x9   :  { %578 = shalt.err (!%p575_p2)
}
   0xa   :  { %s579_s14 = scalar_lea.vmem %s36_s28, 1024  ;;  %p584_p4 = scmp.lt.s32.totalorder %s36_s28, %s36_s28 }
   0xb   :  { %p580_p3 = scmp.ne.s32.totalorder %s36_s28, %s579_s14  ;;  %p585_p5 = scmp.lt.s32.totalorder %s579_s14, %s579_s14 }
   0xd   :  { %p586_p6 = por %p585_p5, %p584_p4 }
   0xf   :  { %p587_p7 = pnand %p586_p6, %p580_p3 }
  0x11   :  { %590 = shalt.err (!%p587_p7)
}
  0x12   :  { %s688_s15 = smov 64   ;;  %s689_s16 = smov 4  }
  0x13   :  { %41 = dma.hbm_to_vmem [thread:$0]  %s826_s1, 1024, %s36_s28, [#allocation6], %s688_s15, %s688_s15, %s689_s16  }
  0x14   :  { %s690_s19 = smov [#allocation2]   ;;  %s591_s23 = scalar_lea.hbm %s825_s0, 512 }
  0x15   :  { %s23_s20 = sshll.u32 %s690_s19, 4  ;;  %p592_p8 = scmp.ne.s32.totalorder %s825_s0, %s591_s23  ;;  %s24_s20 = int_to_ptr.vmem [resolvable:$true] %s23_s20 }
  0x16   :  { %p595_p9 = scmp.lt.u32.totalorder %s591_s23, %s825_s0 }
  0x18   :  { %p597_p10 = pnand %p595_p9, %p592_p8 }
  0x1a   :  { %600 = shalt.err (!%p597_p10)
}
  0x1b   :  { %s601_s29 = scalar_lea.vmem %s24_s20, 512  ;;  %p606_p12 = scmp.lt.s32.totalorder %s24_s20, %s24_s20 }
  0x1c   :  { %p602_p11 = scmp.ne.s32.totalorder %s24_s20, %s601_s29  ;;  %p607_p13 = scmp.lt.s32.totalorder %s601_s29, %s601_s29 }
  0x1e   :  { %p608_p0 = por %p607_p13, %p606_p12 }
  0x20   :  { %p609_p1 = pnand %p608_p0, %p602_p11 }
  0x22   :  { %612 = shalt.err (!%p609_p1)
}
  0x23   :  { %s691_s1 = smov 128   ;;  %s692_s28 = smov 8  }
  0x24   :  { %29 = dma.hbm_to_vmem [thread:$0]  %s825_s0, 512, %s24_s20, [#allocation3], %s691_s1, %s691_s1, %s692_s28  }
  0x25   :  { %s693_s10 = smov [#allocation7]   ;;  %s613_s14 = scalar_lea.hbm %s829_s4, 1024 }
  0x26   :  { %s51_s11 = sshll.u32 %s693_s10, 4  ;;  %p614_p2 = scmp.ne.s32.totalorder %s829_s4, %s613_s14  ;;  %s52_s11 = int_to_ptr.vmem [resolvable:$true] %s51_s11 }
  0x27   :  { %p617_p3 = scmp.lt.u32.totalorder %s613_s14, %s829_s4 }
  0x29   :  { %p619_p4 = pnand %p617_p3, %p614_p2 }
  0x2b   :  { %622 = shalt.err (!%p619_p4)
}
  0x2c   :  { %s623_s22 = scalar_lea.vmem %s52_s11, 1024  ;;  %p628_p6 = scmp.lt.s32.totalorder %s52_s11, %s52_s11 }
  0x2d   :  { %p624_p5 = scmp.ne.s32.totalorder %s52_s11, %s623_s22  ;;  %p629_p7 = scmp.lt.s32.totalorder %s623_s22, %s623_s22 }
  0x2f   :  { %p630_p8 = por %p629_p7, %p628_p6 }
  0x31   :  { %p631_p9 = pnand %p630_p8, %p624_p5 }
  0x33   :  { %634 = shalt.err (!%p631_p9)
}
  0x34   :  { %57 = dma.hbm_to_vmem [thread:$0]  %s829_s4, 1024, %s52_s11, [#allocation6], %s688_s15, %s688_s15, %s689_s16  }
  0x35   :  { %679 = dma.done.wait [#allocation3], 512  }
  0x36   :  { %680 = vsyncadd [#allocation3], 4294966784 }
  0x37   :  { %681 = dma.done.wait [#allocation6], 2048  }
  0x38   :  { %682 = vsyncadd [#allocation6], 4294965248  ;;  %v553_v0 = vld [vmem:[#allocation5] sm:$0xff]   ;;  %v554_v1 = vld [vmem:[#allocation5 + $0x8] sm:$0xff]  }
  0x39   :  { %504 = vmatprep.subr.bf16.mxu0 %v553_v0  ;;  %v555_v2 = vld [vmem:[#allocation5 + $0x10] sm:$0xff]   ;;  %v556_v3 = vld [vmem:[#allocation5 + $0x18] sm:$0xff]   ;;  %v72_v4 = vld [vmem:[#allocation2] sm:$0xff] }
  0x3a   :  { %505 = vmatpush3.bf16.msra.mxu0 %v553_v0  ;;  %v73_v5 = vld [vmem:[#allocation2 + $0x8] sm:$0xff]  ;;  %v561_v7 = vld [vmem:[#allocation7] sm:$0xff]   ;;  %v563_v10 = vld [vmem:[#allocation7 + $0x10] sm:$0xff]  }
  0x3b   :  { %506 = vmatprep.subr.bf16.mxu0 %v554_v1  ;;  %v76_v6 = vpack.c.bf16 %v73_v5, %v72_v4  ;;  %v562_v8 = vld [vmem:[#allocation7 + $0x8] sm:$0xff]   ;;  %v557_v9 = vld [vmem:[#allocation5 + $0x20] sm:$0xff]   ;;  %524 = vmatprep.subr.bf16.mxu1 %v561_v7  ;;  %v564_v12 = vld [vmem:[#allocation7 + $0x18] sm:$0xff]  }
  0x3c   :  { %525 = vmatpush3.bf16.msra.mxu1 %v561_v7  ;;  %v558_v11 = vld [vmem:[#allocation5 + $0x28] sm:$0xff]   ;;  %v559_v13 = vld [vmem:[#allocation5 + $0x30] sm:$0xff]   ;;  %v565_v14 = vld [vmem:[#allocation7 + $0x20] sm:$0xff]  }
  0x3d   :  { %520 = vmatprep.mubr.bf16.mxu0 %v76_v6  ;;  %526 = vmatprep.subr.bf16.mxu1 %v562_v8  ;;  %v560_v15 = vld [vmem:[#allocation5 + $0x38] sm:$0xff]   ;;  %v74_v16 = vld [vmem:[#allocation2 + $0x10] sm:$0xff]  ;;  %v566_v19 = vld [vmem:[#allocation7 + $0x28] sm:$0xff]  }
  0x3e   :  { %507 = vmatpush3.bf16.msra.mxu0 %v554_v1  ;;  %v75_v17 = vld [vmem:[#allocation2 + $0x18] sm:$0xff]  ;;  %v567_v20 = vld [vmem:[#allocation7 + $0x30] sm:$0xff]   ;;  %v434_v22 = vld [vmem:[%s827_s2] ss:$0 sm:$0xff]  ;;  %s694_s2 = smov [#allocation8]  }
  0x3f   :  { %508 = vmatprep.subr.bf16.mxu0 %v555_v2  ;;  %v77_v18 = vpack.c.bf16 %v75_v17, %v74_v16  ;;  %v568_v21 = vld [vmem:[#allocation7 + $0x38] sm:$0xff]   ;;  %v435_v24 = vld [vmem:[%s828_s3] ss:$0 sm:$0xff]  ;;  %s397_s3 = sshll.u32 %s694_s2, 4  ;;  %s398_s3 = int_to_ptr.vmem [resolvable:$true] %s397_s3 }
  0x40   :  { %527 = vmatpush3.bf16.msra.mxu1 %v562_v8  ;;  %s635_s26 = scalar_lea.vmem %s398_s3, 256  ;;  %p640_p11 = scmp.lt.s32.totalorder %s398_s3, %s398_s3 }
  0x41   :  { %528 = vmatprep.subr.bf16.mxu1 %v563_v10  ;;  %p636_p10 = scmp.ne.s32.totalorder %s398_s3, %s635_s26  ;;  %p641_p12 = scmp.lt.s32.totalorder %s635_s26, %s635_s26 }
  0x42   :  { %509 = vmatpush3.bf16.msra.mxu0 %v555_v2 }
  0x43   :  { %510 = vmatprep.subr.bf16.mxu0 %v556_v3  ;;  %p642_p13 = por %p641_p12, %p640_p11 }
  0x44   :  { %529 = vmatpush3.bf16.msra.mxu1 %v563_v10 }
  0x45   :  { %530 = vmatprep.subr.bf16.mxu1 %v564_v12  ;;  %p643_p0 = pnand %p642_p13, %p636_p10 }
  0x46   :  { %511 = vmatpush3.bf16.msra.mxu0 %v556_v3 }
  0x47   :  { %512 = vmatprep.subr.bf16.mxu0 %v557_v9 }
  0x48   :  { %531 = vmatpush3.bf16.msra.mxu1 %v564_v12 }
  0x49   :  { %532 = vmatprep.subr.bf16.mxu1 %v565_v14 }
  0x4a   :  { %513 = vmatpush3.bf16.msra.mxu0 %v557_v9 }
  0x4b   :  { %514 = vmatprep.subr.bf16.mxu0 %v558_v11 }
  0x4c   :  { %533 = vmatpush3.bf16.msra.mxu1 %v565_v14 }
  0x4d   :  { %534 = vmatprep.subr.bf16.mxu1 %v566_v19 }
  0x4e   :  { %515 = vmatpush3.bf16.msra.mxu0 %v558_v11 }
  0x4f   :  { %516 = vmatprep.subr.bf16.mxu0 %v559_v13 }
  0x50   :  { %535 = vmatpush3.bf16.msra.mxu1 %v566_v19 }
  0x51   :  { %536 = vmatprep.subr.bf16.mxu1 %v567_v20 }
  0x52   :  { %517 = vmatpush3.bf16.msra.mxu0 %v559_v13 }
  0x53   :  { %518 = vmatprep.subr.bf16.mxu0 %v560_v15 }
  0x54   :  { %537 = vmatpush3.bf16.msra.mxu1 %v567_v20 }
  0x55   :  { %538 = vmatprep.subr.bf16.mxu1 %v568_v21 }
  0x56   :  { %519 = vmatpush3.bf16.msra.mxu0 %v560_v15 }
  0x58   :  { %539 = vmatpush3.bf16.msra.mxu1 %v568_v21 }
  0x59   :  { %521 = vmatmul.mubr.bf16.vlgmr.msra.gmra.mrb[0].mxu0 %v77_v18 }
 0x12c   :  { %v522_v23 = vpop.f32.mrb[0].mxu0 }
 0x12d   :  { %v200_v25 = vmul.f32 %v522_v23, %v434_v22  ;;  %v176_v26 = vpop.f32.mrb[1].mxu0 }
 0x12e   :  { %v198_v27 = vmul.f32 %v434_v22, %v176_v26  ;;  %v523_v28 = vpop.f32.mrb[2].mxu0 }
 0x12f   :  { %v211_v29 = vadd.f32 %v435_v24, %v200_v25  ;;  %v201_v30 = vmul.f32 %v523_v28, %v434_v22  ;;  %v179_v31 = vpop.f32.mrb[3].mxu0 }
 0x130   :  { %v209_v32 = vadd.f32 %v435_v24, %v198_v27  ;;  %v199_v33 = vmul.f32 %v434_v22, %v179_v31 }
 0x131   :  { %v212_v34 = vadd.f32 %v435_v24, %v201_v30  ;;  %v215_v36 = vmax.f32 %v211_v29, 0.0 }
 0x132   :  { %v210_v35 = vadd.f32 %v435_v24, %v199_v33  ;;  %v213_v38 = vmax.f32 %v209_v32, 0.0 }
 0x133   :  { %v216_v37 = vmax.f32 %v212_v34, 0.0 }
 0x134   :  { %v214_v39 = vmax.f32 %v210_v35, 0.0 }
 0x135   :  { %v218_v40 = vpack.c.bf16 %v216_v37, %v215_v36 }
 0x136   :  { %v217_v41 = vpack.c.bf16 %v214_v39, %v213_v38 }
 0x137   :  { %482 = vst [vmem:[#allocation8 + $0x8] sm:$0xff] %v218_v40  }
 0x138   :  { %540 = vmatprep.mubr.bf16.mxu1 %v217_v41  ;;  %466 = vst [vmem:[#allocation8] sm:$0xff] %v217_v41  }
 0x139   :  { %541 = vmatmul.mubr.bf16.vlgmr.msra.gmra.mrb[0].mxu1 %v218_v40 }
 0x13a   :  { %646 = shalt.err (!%p643_p0)
}
 0x13b   :  { %s647_s1 = scalar_lea.hbm %s832_s7, 256 }
 0x13c   :  { %p648_p1 = scmp.ne.s32.totalorder %s832_s7, %s647_s1  ;;  %p651_p2 = scmp.lt.u32.totalorder %s647_s1, %s832_s7 }
 0x13e   :  { %p653_p3 = pnand %p651_p2, %p648_p1 }
 0x140   :  { %656 = shalt.err (!%p653_p3)
}
 0x141   :  { %403 = dma.vmem_to_hbm [thread:$0]  %s398_s3, 256, %s832_s7, [#allocation4], %s688_s15, %s688_s15, %s689_s16  }
 0x142   :  { %v448_v42 = vld [vmem:[%s830_s5] ss:$0 sm:$0xff]  ;;  %s695_s19 = smov [#allocation9]  }
 0x143   :  { %v449_v46 = vld [vmem:[%s831_s6] ss:$0 sm:$0xff]  ;;  %s409_s7 = sshll.u32 %s695_s19, 4  ;;  %s410_s7 = int_to_ptr.vmem [resolvable:$true] %s409_s7 }
 0x144   :  { %s657_s5 = scalar_lea.vmem %s410_s7, 256  ;;  %p662_p5 = scmp.lt.s32.totalorder %s410_s7, %s410_s7 }
 0x145   :  { %p658_p4 = scmp.ne.s32.totalorder %s410_s7, %s657_s5  ;;  %p663_p6 = scmp.lt.s32.totalorder %s657_s5, %s657_s5 }
 0x147   :  { %p664_p7 = por %p663_p6, %p662_p5 }
 0x149   :  { %p665_p8 = pnand %p664_p7, %p658_p4 }
 0x20c   :  { %v542_v43 = vpop.f32.mrb[0].mxu1 }
 0x20d   :  { %v359_v44 = vmul.f32 %v542_v43, %v448_v42  ;;  %v335_v45 = vpop.f32.mrb[1].mxu1 }
 0x20e   :  { %v357_v47 = vmul.f32 %v448_v42, %v335_v45  ;;  %v543_v48 = vpop.f32.mrb[2].mxu1 }
 0x20f   :  { %v360_v49 = vmul.f32 %v543_v48, %v448_v42  ;;  %v338_v50 = vpop.f32.mrb[3].mxu1  ;;  %v370_v52 = vadd.f32 %v449_v46, %v359_v44 }
 0x210   :  { %v358_v51 = vmul.f32 %v448_v42, %v338_v50  ;;  %v368_v54 = vadd.f32 %v449_v46, %v357_v47 }
 0x211   :  { %v371_v53 = vadd.f32 %v449_v46, %v360_v49 }
 0x212   :  { %v369_v55 = vadd.f32 %v449_v46, %v358_v51 }
 0x213   :  { %v480_v56 = vpack.c.bf16 %v371_v53, %v370_v52 }
 0x214   :  { %v475_v57 = vpack.c.bf16 %v369_v55, %v368_v54 }
 0x215   :  { %483 = vst [vmem:[#allocation9 + $0x8] sm:$0xff] %v480_v56  }
 0x216   :  { %476 = vst [vmem:[#allocation9] sm:$0xff] %v475_v57  }
 0x217   :  { %668 = shalt.err (!%p665_p8)
}
 0x218   :  { %s669_s22 = scalar_lea.hbm %s833_s8, 256 }
 0x219   :  { %p670_p9 = scmp.ne.s32.totalorder %s833_s8, %s669_s22  ;;  %p673_p10 = scmp.lt.u32.totalorder %s669_s22, %s833_s8 }
 0x21b   :  { %p675_p11 = pnand %p673_p10, %p670_p9 }
 0x21d   :  { %678 = shalt.err (!%p675_p11)
}
 0x21e   :  { %415 = dma.vmem_to_hbm [thread:$0]  %s410_s7, 256, %s833_s8, [#allocation10], %s688_s15, %s688_s15, %s689_s16  }
 0x21f   :  { %683 = dma.done.wait [#allocation4], 256  }
 0x220   :  { %684 = vsyncadd [#allocation4], 4294967040 }
 0x221   :  { %685 = dma.done.wait [#allocation10], 256  }
 0x222   :  { %686 = vsyncadd [#allocation10], 4294967040 }
 0x223   :  { %422 = vsyncpa [#allocation3], 1 }
 0x224   :  { %423 = vsyncpa [#allocation6], 1 }
 0x225   :  { %424 = vsyncpa [#allocation4], 1 }
 0x226   :  { %425 = vsyncpa [#allocation10], 1 }

</bundles_post_ra>
